<compile_context>
chip_gen: v7x
topology: tpu7x:2x2x1
jax: 0.10.0
libtpu: 0.0.40
codegen_flags: <defaults>
</compile_context>

<pallas_src>
import jax
import jax.numpy as jnp
from jax import lax
from jax.experimental import pallas as pl
from jax.experimental.pallas import tpu as pltpu


_EPS = 1e-12              # F.normalize default eps
_CH_CHUNK = 8             # channels converted to f32 / squared per inner chunk
_MAX_TILE_LANES = 16384   # cap on spatial tile width (bounds unrolling / live vregs)


# ----------------------------------------------------------------------------- kernel


def _channel_sumsq(ref):
    """sum over channels of x^2 in f32, chunked so the f32 working set stays small."""
    nb, n_ch, t = ref.shape
    acc = jnp.zeros((nb, t), jnp.float32)
    c = 0
    while c < n_ch:                              # static (trace-time) loop
        cc = min(_CH_CHUNK, n_ch - c)
        x = ref[:, c:c + cc, :].astype(jnp.float32)      # (nb, cc, t)
        acc = acc + jnp.sum(x * x, axis=1)               # (nb, t)
        c += cc
    return acc


def _at_loss_kernel(s_ref, t_ref, out_ref, ss_acc, tt_acc, st_acc):
    """One batch block per outer grid step; accumulate over HW tiles (inner axis).

    Block shapes:
      s_ref : (Nb, Cs, T)    t_ref : (Nb, Ct, T)    out_ref : (1, Nb, 128)
      ss/tt/st_acc : (Nb, 128) f32 VMEM scratch (persist across HW tiles)
    """
    hw = pl.program_id(1)

    @pl.when(hw == 0)
    def _init():
        ss_acc[...] = jnp.zeros_like(ss_acc)
        tt_acc[...] = jnp.zeros_like(tt_acc)
        st_acc[...] = jnp.zeros_like(st_acc)

    nb, c_s, t = s_ref.shape
    c_t = t_ref.shape[1]

    a_s = _channel_sumsq(s_ref)                  # (Nb, T) f32, sum_c x^2
    a_t = _channel_sumsq(t_ref)

    # Fold the T lanes into lane-dense (Nb, 128) partials with pure VPU vreg adds.
    full, rem = divmod(t, 128)
    ss_p = jnp.zeros((nb, 128), jnp.float32)
    tt_p = jnp.zeros((nb, 128), jnp.float32)
    st_p = jnp.zeros((nb, 128), jnp.float32)
    for l in range(full):                        # static 128-aligned lane slices
        sb = a_s[:, l * 128:(l + 1) * 128]
        tb = a_t[:, l * 128:(l + 1) * 128]
        ss_p = ss_p + sb * sb
        tt_p = tt_p + tb * tb
        st_p = st_p + sb * tb
    if rem:
        # Remainder lanes only occur in the single-tile (untiled, unpadded) case.
        sb = a_s[:, full * 128:t]
        tb = a_t[:, full * 128:t]
        lane0 = (lax.broadcasted_iota(jnp.int32, (nb, 128), 1) == 0).astype(jnp.float32)
        ss_p = ss_p + jnp.sum(sb * sb, axis=-1, keepdims=True) * lane0
        tt_p = tt_p + jnp.sum(tb * tb, axis=-1, keepdims=True) * lane0
        st_p = st_p + jnp.sum(sb * tb, axis=-1, keepdims=True) * lane0

    ss_acc[...] += ss_p
    tt_acc[...] += tt_p
    st_acc[...] += st_p

    @pl.when(hw == pl.num_programs(1) - 1)
    def _finalize():
        # Single cross-lane reduce per batch block, only at the last HW tile.
        ss = jnp.sum(ss_acc[...], axis=-1, keepdims=True)    # (Nb, 1)
        tt = jnp.sum(tt_acc[...], axis=-1, keepdims=True)
        st = jnp.sum(st_acc[...], axis=-1, keepdims=True)
        # Channel-sum (not mean) was accumulated => scale eps by C to keep exact
        # F.normalize(eps=1e-12) semantics.  1/max(||a||, eps) == rsqrt(max(||a||^2, eps^2)).
        eps_s2 = jnp.float32((_EPS * c_s) ** 2)
        eps_t2 = jnp.float32((_EPS * c_t) ** 2)
        inv_ns = lax.rsqrt(jnp.maximum(ss, eps_s2))
        inv_nt = lax.rsqrt(jnp.maximum(tt, eps_t2))
        r = (ss * inv_ns * inv_ns
             + tt * inv_nt * inv_nt
             - 2.0 * st * inv_ns * inv_nt)                   # (Nb, 1) per-batch sum over HW
        out_ref[...] = jnp.broadcast_to(r[None, :, :], out_ref.shape)


# ------------------------------------------------------------------------- host logic


def _round_up(x: int, m: int) -> int:
    return (x + m - 1) // m * m


def _cdiv(a: int, b: int) -> int:
    return -(-a // b)


def _sublane_multiple(dtype) -> int:
    # f32 -> 8 sublanes per vreg, bf16 -> 16, int8/fp8 -> 32 (VMEM tiling granularity)
    return max(8, 32 // jnp.dtype(dtype).itemsize)


def _vmem_budgets():
    """Generation-aware VMEM budgets (v5e/v6e: 128 MiB, v7x: 64 MiB per TC)."""
    cap = 64 * 1024 * 1024  # conservative default (v7x per-TensorCore VMEM)
    try:
        info = pltpu.get_tpu_info()
        cap_attr = getattr(info, "vmem_capacity_bytes", None)
        if cap_attr:
            cap = int(cap_attr)
    except Exception:
        pass
    input_budget = max(8 << 20, int(cap * 0.40))
    vmem_limit = min(cap, max(input_budget + (8 << 20), int(cap * 0.80)))
    return input_budget, vmem_limit


def _pick_batch_block(n: int, bytes_per_batch: int, budget: int) -> int:
    """Largest divisor of n whose per-step footprint fits the budget; keep >= 2 blocks
    when n >= 2 so the 'parallel' batch axis can shard across v7x's two TensorCores."""
    max_nb = max(1, int(budget // max(1, bytes_per_batch)))
    if n >= 2:
        max_nb = min(max_nb, max(1, n // 2))
    best = 1
    for d in range(1, min(n, max_nb) + 1):
        if n % d == 0:
            best = d
    return best
    # TODO(synk): for N == 1 split the HW reduction into per-core partial outputs
    # (extra 'parallel' grid axis combined in the wrapper) so v7x's second core is used.


def at_loss(s_feature, t_feature, loss_weight: float = 1.0):
    """Pallas implementation of ATLoss.forward(s_feature, t_feature) (NCHW inputs)."""
    N, Cs, H, W = s_feature.shape
    Nt, Ct, Ht, Wt = t_feature.shape
    assert (N, H, W) == (Nt, Ht, Wt), "batch / spatial dims must match"
    HW = H * W

    # Pure-view reshape (no transpose): NCHW -> (N, C, H*W). Native dtype is kept;
    # the f32 cast happens inside the kernel.
    s2 = s_feature.reshape(N, Cs, HW)
    t2 = t_feature.reshape(N, Ct, HW)

    s_item = jnp.dtype(s_feature.dtype).itemsize
    t_item = jnp.dtype(t_feature.dtype).itemsize
    input_budget, vmem_limit = _vmem_budgets()

    # Bytes per (batch element, spatial lane) per grid step:
    #   * double-buffered native-dtype input tiles (with sublane padding for small C)
    #   * f32 intermediates of the chunked channel loop + a_s / a_t
    cs_pad = _round_up(Cs, _sublane_multiple(s_feature.dtype))
    ct_pad = _round_up(Ct, _sublane_multiple(t_feature.dtype))
    in_bpl = 2 * (cs_pad * s_item + ct_pad * t_item)
    interm_bpl = 4 * (2 * _CH_CHUNK + 4)
    bpl = in_bpl + interm_bpl

    max_lanes = min(_MAX_TILE_LANES, max(128, (input_budget // bpl) // 128 * 128))

    HW128 = _round_up(HW, 128)
    if HW128 <= max_lanes:
        # Whole spatial extent fits in one tile: no zero-pad pass needed.
        T, HW_pad, n_hw = HW, HW, 1
    else:
        # Tile the spatial axis with a 128-multiple T; zero-pad HW so T divides it.
        n_hw = _cdiv(HW128, max_lanes)
        T = _round_up(_cdiv(HW128, n_hw), 128)
        HW_pad = T * n_hw
    if HW_pad > HW:
        pad = ((0, 0), (0, 0), (0, HW_pad - HW))
        s2 = jnp.pad(s2, pad)   # zero-padded positions contribute exactly 0 to ss/tt/st
        t2 = jnp.pad(t2, pad)

    Nb = _pick_batch_block(N, bpl * _round_up(T, 128), input_budget)
    n_bb = N // Nb

    out = pl.pallas_call(
        _at_loss_kernel,
        out_shape=jax.ShapeDtypeStruct((n_bb, Nb, 128), jnp.float32),
        grid=(n_bb, n_hw),
        in_specs=[
            pl.BlockSpec((Nb, Cs, T), lambda b, h: (b, 0, h)),
            pl.BlockSpec((Nb, Ct, T), lambda b, h: (b, 0, h)),
        ],
        out_specs=pl.BlockSpec((1, Nb, 128), lambda b, h: (b, 0, 0)),
        scratch_shapes=[
            pltpu.VMEM((Nb, 128), jnp.float32),   # ss
            pltpu.VMEM((Nb, 128), jnp.float32),   # tt
            pltpu.VMEM((Nb, 128), jnp.float32),   # st
        ],
        compiler_params=pltpu.CompilerParams(
            dimension_semantics=("parallel", "arbitrary"),
            vmem_limit_bytes=int(vmem_limit),
        ),
        cost_estimate=pl.CostEstimate(
            flops=int(N * HW_pad * (3 * Cs + 3 * Ct + 8)),
            transcendentals=int(2 * N),
            bytes_accessed=int(N * HW_pad * (Cs * s_item + Ct * t_item)
                               + n_bb * Nb * 128 * 4),
        ),
    )(s2, t2)

    per_batch = out[:, :, 0].reshape(-1)                 # (N,) sum over HW per batch
    loss = jnp.sum(per_batch) / jnp.float32(N * HW)      # mean over N*HW elements
    return jnp.float32(loss_weight) * loss


def _at_loss_ref(s_feature, t_feature, loss_weight: float = 1.0):
    """Pure-JAX reference mirroring the PyTorch code."""
    def attn(x):
        a = jnp.mean(x.astype(jnp.float32) ** 2, axis=1).reshape(x.shape[0], -1)
        nrm = jnp.sqrt(jnp.sum(a * a, axis=1, keepdims=True))
        return a / jnp.maximum(nrm, 1e-12)
    d = attn(s_feature) - attn(t_feature)
    return jnp.float32(loss_weight) * jnp.mean(d * d)


if __name__ == "__main__":
    key = jax.random.PRNGKey(0)
    ks, kt, ks2, kt2 = jax.random.split(key, 4)

    # Small NCHW conv-feature inputs consistent with the module.
    s_feature = jax.random.normal(ks, (2, 4, 16, 16), dtype=jnp.float32)
    t_feature = jax.random.normal(kt, (2, 4, 16, 16), dtype=jnp.float32)

    loss = jax.block_until_ready(at_loss(s_feature, t_feature, loss_weight=1.0))
    ref = jax.block_until_ready(_at_loss_ref(s_feature, t_feature, loss_weight=1.0))
    assert jnp.allclose(loss, ref, rtol=1e-4, atol=1e-6), (loss, ref)

    # Second check: bf16 inputs, mismatched channel counts, HW not a multiple of 128.
    s_b = jax.random.normal(ks2, (4, 8, 7, 7), dtype=jnp.bfloat16)
    t_b = jax.random.normal(kt2, (4, 16, 7, 7), dtype=jnp.bfloat16)
    loss_b = jax.block_until_ready(at_loss(s_b, t_b, loss_weight=0.5))
    ref_b = jax.block_until_ready(_at_loss_ref(s_b, t_b, loss_weight=0.5))
    assert jnp.allclose(loss_b, ref_b, rtol=1e-3, atol=1e-5), (loss_b, ref_b)

    print("KERNEL_OK")
</pallas_src>

<mosaic_0001>
module attributes {stable_mosaic.version = 11 : i64} {
  func.func @_at_loss_kernel(%arg0: i32, %arg1: i32, %arg2: memref<1x4x256xf32, #tpu.memory_space<vmem>>, %arg3: memref<1x4x256xf32, #tpu.memory_space<vmem>>, %arg4: memref<1x1x128xf32, #tpu.memory_space<vmem>>, %arg5: memref<1x128xf32, #tpu.memory_space<vmem>>, %arg6: memref<1x128xf32, #tpu.memory_space<vmem>>, %arg7: memref<1x128xf32, #tpu.memory_space<vmem>>) attributes {dimension_semantics = [#tpu.dimension_semantics<parallel>, #tpu.dimension_semantics<arbitrary>], iteration_bounds = array<i64: 2, 1>, scalar_prefetch = 0 : i64, scratch_operands = 3 : i64, tpu.core_type = #tpu.core_type<tc>, window_params = [{transform_indices = @transform_0, window_bounds = array<i64: 1, 4, 256>}, {transform_indices = @transform_1, window_bounds = array<i64: 1, 4, 256>}, {transform_indices = @transform_2, window_bounds = array<i64: 1, 1, 128>}]} {
    %c0_i32 = arith.constant 0 : i32
    %0 = arith.cmpi eq, %arg1, %c0_i32 : i32
    %1 = arith.extui %0 : i1 to i32
    %c0_i32_0 = arith.constant 0 : i32
    %2 = arith.cmpi ne, %1, %c0_i32_0 : i32
    scf.if %2 {
      %cst_26 = arith.constant 0.000000e+00 : f32
      %44 = vector.broadcast %cst_26 : f32 to vector<1x128xf32>
      %c0_27 = arith.constant 0 : index
      %c0_28 = arith.constant 0 : index
      %45 = vector.load %arg5[%c0_27, %c0_28] : memref<1x128xf32, #tpu.memory_space<vmem>>, vector<1x128xf32>
      tpu.vector_store %arg5[%c0_27, %c0_28], %44 {strides = array<i32>} : memref<1x128xf32, #tpu.memory_space<vmem>>, vector<1x128xf32>,
      %cst_29 = arith.constant 0.000000e+00 : f32
      %46 = vector.broadcast %cst_29 : f32 to vector<1x128xf32>
      %c0_30 = arith.constant 0 : index
      %c0_31 = arith.constant 0 : index
      %47 = vector.load %arg6[%c0_30, %c0_31] : memref<1x128xf32, #tpu.memory_space<vmem>>, vector<1x128xf32>
      tpu.vector_store %arg6[%c0_30, %c0_31], %46 {strides = array<i32>} : memref<1x128xf32, #tpu.memory_space<vmem>>, vector<1x128xf32>,
      %cst_32 = arith.constant 0.000000e+00 : f32
      %48 = vector.broadcast %cst_32 : f32 to vector<1x128xf32>
      %c0_33 = arith.constant 0 : index
      %c0_34 = arith.constant 0 : index
      %49 = vector.load %arg7[%c0_33, %c0_34] : memref<1x128xf32, #tpu.memory_space<vmem>>, vector<1x128xf32>
      tpu.vector_store %arg7[%c0_33, %c0_34], %48 {strides = array<i32>} : memref<1x128xf32, #tpu.memory_space<vmem>>, vector<1x128xf32>,
    } else {
    }
    %cst = arith.constant 0.000000e+00 : f32
    %3 = vector.broadcast %cst : f32 to vector<1x256xf32>
    %c0 = arith.constant 0 : index
    %c0_1 = arith.constant 0 : index
    %c0_2 = arith.constant 0 : index
    %4 = vector.load %arg2[%c0, %c0_1, %c0_2] : memref<1x4x256xf32, #tpu.memory_space<vmem>>, vector<1x4x256xf32>
    %5 = arith.mulf %4, %4 : vector<1x4x256xf32>
    %cst_3 = arith.constant dense<0.000000e+00> : vector<1x256xf32>
    %6 = vector.multi_reduction <add>, %5, %cst_3 [1] : vector<1x4x256xf32> to vector<1x256xf32>
    %7 = arith.addf %3, %6 : vector<1x256xf32>
    %cst_4 = arith.constant 0.000000e+00 : f32
    %8 = vector.broadcast %cst_4 : f32 to vector<1x256xf32>
    %c0_5 = arith.constant 0 : index
    %c0_6 = arith.constant 0 : index
    %c0_7 = arith.constant 0 : index
    %9 = vector.load %arg3[%c0_5, %c0_6, %c0_7] : memref<1x4x256xf32, #tpu.memory_space<vmem>>, vector<1x4x256xf32>
    %10 = arith.mulf %9, %9 : vector<1x4x256xf32>
    %cst_8 = arith.constant dense<0.000000e+00> : vector<1x256xf32>
    %11 = vector.multi_reduction <add>, %10, %cst_8 [1] : vector<1x4x256xf32> to vector<1x256xf32>
    %12 = arith.addf %8, %11 : vector<1x256xf32>
    %cst_9 = arith.constant 0.000000e+00 : f32
    %13 = vector.broadcast %cst_9 : f32 to vector<1x128xf32>
    %cst_10 = arith.constant 0.000000e+00 : f32
    %14 = vector.broadcast %cst_10 : f32 to vector<1x128xf32>
    %cst_11 = arith.constant 0.000000e+00 : f32
    %15 = vector.broadcast %cst_11 : f32 to vector<1x128xf32>
    %16 = vector.extract_strided_slice %7 {offsets = [0, 0], sizes = [1, 128], strides = [1, 1]} : vector<1x256xf32> to vector<1x128xf32>
    %17 = vector.extract_strided_slice %12 {offsets = [0, 0], sizes = [1, 128], strides = [1, 1]} : vector<1x256xf32> to vector<1x128xf32>
    %18 = arith.mulf %16, %16 : vector<1x128xf32>
    %19 = arith.addf %13, %18 : vector<1x128xf32>
    %20 = arith.mulf %17, %17 : vector<1x128xf32>
    %21 = arith.addf %14, %20 : vector<1x128xf32>
    %22 = arith.mulf %16, %17 : vector<1x128xf32>
    %23 = arith.addf %15, %22 : vector<1x128xf32>
    %24 = vector.extract_strided_slice %7 {offsets = [0, 128], sizes = [1, 128], strides = [1, 1]} : vector<1x256xf32> to vector<1x128xf32>
    %25 = vector.extract_strided_slice %12 {offsets = [0, 128], sizes = [1, 128], strides = [1, 1]} : vector<1x256xf32> to vector<1x128xf32>
    %26 = arith.mulf %24, %24 : vector<1x128xf32>
    %27 = arith.addf %19, %26 : vector<1x128xf32>
    %28 = arith.mulf %25, %25 : vector<1x128xf32>
    %29 = arith.addf %21, %28 : vector<1x128xf32>
    %30 = arith.mulf %24, %25 : vector<1x128xf32>
    %31 = arith.addf %23, %30 : vector<1x128xf32>
    %c0_12 = arith.constant 0 : index
    %c0_13 = arith.constant 0 : index
    %32 = vector.load %arg5[%c0_12, %c0_13] : memref<1x128xf32, #tpu.memory_space<vmem>>, vector<1x128xf32>
    %33 = arith.addf %32, %27 : vector<1x128xf32>
    %c0_14 = arith.constant 0 : index
    %c0_15 = arith.constant 0 : index
    %34 = vector.load %arg5[%c0_14, %c0_15] : memref<1x128xf32, #tpu.memory_space<vmem>>, vector<1x128xf32>
    tpu.vector_store %arg5[%c0_14, %c0_15], %33 {strides = array<i32>} : memref<1x128xf32, #tpu.memory_space<vmem>>, vector<1x128xf32>,
    %c0_16 = arith.constant 0 : index
    %c0_17 = arith.constant 0 : index
    %35 = vector.load %arg6[%c0_16, %c0_17] : memref<1x128xf32, #tpu.memory_space<vmem>>, vector<1x128xf32>
    %36 = arith.addf %35, %29 : vector<1x128xf32>
    %c0_18 = arith.constant 0 : index
    %c0_19 = arith.constant 0 : index
    %37 = vector.load %arg6[%c0_18, %c0_19] : memref<1x128xf32, #tpu.memory_space<vmem>>, vector<1x128xf32>
    tpu.vector_store %arg6[%c0_18, %c0_19], %36 {strides = array<i32>} : memref<1x128xf32, #tpu.memory_space<vmem>>, vector<1x128xf32>,
    %c0_20 = arith.constant 0 : index
    %c0_21 = arith.constant 0 : index
    %38 = vector.load %arg7[%c0_20, %c0_21] : memref<1x128xf32, #tpu.memory_space<vmem>>, vector<1x128xf32>
    %39 = arith.addf %38, %31 : vector<1x128xf32>
    %c0_22 = arith.constant 0 : index
    %c0_23 = arith.constant 0 : index
    %40 = vector.load %arg7[%c0_22, %c0_23] : memref<1x128xf32, #tpu.memory_space<vmem>>, vector<1x128xf32>
    tpu.vector_store %arg7[%c0_22, %c0_23], %39 {strides = array<i32>} : memref<1x128xf32, #tpu.memory_space<vmem>>, vector<1x128xf32>,
    %c0_i32_24 = arith.constant 0 : i32
    %41 = arith.cmpi eq, %arg1, %c0_i32_24 : i32
    %42 = arith.extui %41 : i1 to i32
    %c0_i32_25 = arith.constant 0 : i32
    %43 = arith.cmpi ne, %42, %c0_i32_25 : i32
    scf.if %43 {
      %c0_26 = arith.constant 0 : index
      %c0_27 = arith.constant 0 : index
      %44 = vector.load %arg5[%c0_26, %c0_27] : memref<1x128xf32, #tpu.memory_space<vmem>>, vector<1x128xf32>
      %cst_28 = arith.constant dense<0.000000e+00> : vector<1xf32>
      %45 = vector.multi_reduction <add>, %44, %cst_28 [1] : vector<1x128xf32> to vector<1xf32>
      %46 = vector.shape_cast %45 : vector<1xf32> to vector<1x1xf32>
      %c0_29 = arith.constant 0 : index
      %c0_30 = arith.constant 0 : index
      %47 = vector.load %arg6[%c0_29, %c0_30] : memref<1x128xf32, #tpu.memory_space<vmem>>, vector<1x128xf32>
      %cst_31 = arith.constant dense<0.000000e+00> : vector<1xf32>
      %48 = vector.multi_reduction <add>, %47, %cst_31 [1] : vector<1x128xf32> to vector<1xf32>
      %49 = vector.shape_cast %48 : vector<1xf32> to vector<1x1xf32>
      %c0_32 = arith.constant 0 : index
      %c0_33 = arith.constant 0 : index
      %50 = vector.load %arg7[%c0_32, %c0_33] : memref<1x128xf32, #tpu.memory_space<vmem>>, vector<1x128xf32>
      %cst_34 = arith.constant dense<0.000000e+00> : vector<1xf32>
      %51 = vector.multi_reduction <add>, %50, %cst_34 [1] : vector<1x128xf32> to vector<1xf32>
      %52 = vector.shape_cast %51 : vector<1xf32> to vector<1x1xf32>
      %cst_35 = arith.constant 1.600000e-23 : f32
      %53 = vector.broadcast %cst_35 : f32 to vector<1x1xf32>
      %54 = arith.maximumf %46, %53 : vector<1x1xf32>
      %55 = math.rsqrt %54 : vector<1x1xf32>
      %cst_36 = arith.constant 1.600000e-23 : f32
      %56 = vector.broadcast %cst_36 : f32 to vector<1x1xf32>
      %57 = arith.maximumf %49, %56 : vector<1x1xf32>
      %58 = math.rsqrt %57 : vector<1x1xf32>
      %59 = arith.mulf %46, %55 : vector<1x1xf32>
      %60 = arith.mulf %59, %55 : vector<1x1xf32>
      %61 = arith.mulf %49, %58 : vector<1x1xf32>
      %62 = arith.mulf %61, %58 : vector<1x1xf32>
      %63 = arith.addf %60, %62 : vector<1x1xf32>
      %cst_37 = arith.constant 2.000000e+00 : f32
      %64 = vector.broadcast %cst_37 : f32 to vector<1x1xf32>
      %65 = arith.mulf %64, %52 : vector<1x1xf32>
      %66 = arith.mulf %65, %55 : vector<1x1xf32>
      %67 = arith.mulf %66, %58 : vector<1x1xf32>
      %68 = arith.subf %63, %67 : vector<1x1xf32>
      %69 = vector.shape_cast %68 : vector<1x1xf32> to vector<1x1x1xf32>
      %70 = vector.shape_cast %69 : vector<1x1x1xf32> to vector<1x1x1xf32>
      %71 = vector.broadcast %70 : vector<1x1x1xf32> to vector<1x1x128xf32>
      %c0_38 = arith.constant 0 : index
      %c0_39 = arith.constant 0 : index
      %c0_40 = arith.constant 0 : index
      %72 = vector.load %arg4[%c0_38, %c0_39, %c0_40] : memref<1x1x128xf32, #tpu.memory_space<vmem>>, vector<1x1x128xf32>
      tpu.vector_store %arg4[%c0_38, %c0_39, %c0_40], %71 {strides = array<i32>} : memref<1x1x128xf32, #tpu.memory_space<vmem>>, vector<1x1x128xf32>,
    } else {
    }
    return
  }
  func.func @transform_0(%arg0: i32, %arg1: i32) -> (i32, i32, i32) {
    %c0_i32 = arith.constant 0 : i32
    %c0_i32_0 = arith.constant 0 : i32
    return %arg0, %c0_i32, %arg1 : i32, i32, i32
  }
  func.func @transform_1(%arg0: i32, %arg1: i32) -> (i32, i32, i32) {
    %c0_i32 = arith.constant 0 : i32
    %c0_i32_0 = arith.constant 0 : i32
    return %arg0, %c0_i32, %arg1 : i32, i32, i32
  }
  func.func @transform_2(%arg0: i32, %arg1: i32) -> (i32, i32, i32) {
    %c0_i32 = arith.constant 0 : i32
    %c0_i32_0 = arith.constant 0 : i32
    %c0_i32_1 = arith.constant 0 : i32
    return %arg0, %c0_i32, %c0_i32_0 : i32, i32, i32
  }
}

</mosaic_0001>

<bundles_post_ra>
// kernel: tpu_custom_call.1
= control target key start
LH: loop header
LB: loop body
LE: loop exit
PB: predicated region body
PF: predicated region fallthrough
CT: control target
= control target key end

     0   :  { %7 = vsyncpa [#allocation6], 0  ;;  %s914_s0 = inlined_call_operand.hbm [shape: f32[2,4,256], index: 0, kind: input, shape index: {}]   ;;  %s915_s1 = inlined_call_operand.hbm [shape: f32[2,4,256], index: 1, kind: input, shape index: {}]   ;;  %s916_s2 = inlined_call_operand.hbm [shape: f32[2,1,128], index: 2, kind: output, shape index: {}]  }
   0x1   :  { %9 = vsyncpa [#allocation6 + $0x1], 0 }
   0x2   :  { %10 = vsyncpa [#allocation9], 0 }
   0x3   :  { %12 = vsyncpa [#allocation9 + $0x1], 0 }
   0x4   :  { %13 = vsyncpa [#allocation7], 0 }
   0x5   :  { %15 = vsyncpa [#allocation7 + $0x1], 0  ;;  %s693_s9 = smov 0   ;;  %s695_s10 = smov 0  }
   0x6   :  { %s697_s11 = smov 0   ;;  %s699_s12 = smov 0  }
   0x7   :  { %s701_s13 = smov 0   ;;  %s703_s14 = smov 0  }
   0x8 LB: > { %s436_s15 = sadd.s32 4294967295, %s672_s14   ;;  %s437_s16 = sadd.s32 4294967294, %s672_s14   ;;  %s672_s14 = sphi %s703_s14, %s21_s14   ;;  %s668_s13 = sphi %s701_s13, %s936_s13   ;;  %s664_s12 = sphi %s699_s12, %s935_s12   ;;  %s660_s11 = sphi %s697_s11, %s934_s11   ;;  %s656_s10 = sphi %s695_s10, %s933_s10   ;;  %s652_s9 = sphi %s693_s9, %s932_s9  }
   0x9   : > { %s33_s17 = sadd.s32 1, %s668_s13  ;;  %s42_s18 = sadd.s32 1, %s660_s11 }
   0xa   : > { %p35_p0 = scmp.ge.s32.totalorder %s33_s17, 2  ;;  %p49_p1 = scmp.ne.s32.totalorder %s660_s11, %s656_s10 }
   0xb   : > { %p50_p2 = scmp.eq.s32.totalorder %s672_s14, 0  ;;  %p55_p3 = scmp.ne.s32.totalorder %s656_s10, %s652_s9 }
   0xc   : > { %s938_s17 = smov (%p35_p0, %s33_s17), 0  ;;  %p56_p5 = scmp.eq.s32.totalorder %s436_s15, 0 }
   0xd   : > { %p734_p4 = por %p50_p2, %p49_p1  ;;  %s37_s20 = ssub.s32 %s668_s13, %s938_s17 }
   0xe   : > { %p107_p6 = scmp.eq.s32.totalorder %s436_s15, 1  ;;  %p40_p7 = scmp.eq.s32.totalorder %s37_s20, 0 }
   0xf   : > { %p740_p8 = por %p56_p5, %p55_p3  ;;  %p113_p10 = scmp.eq.s32.totalorder %s437_s16, 1 }
  0x10   : > { %p744_p9 = por %p107_p6, %p49_p1  ;;  %p471_p13 = scmp.lt.s32.totalorder %s672_s14, 2 }
  0x11   : > { %s920_s21 = scalar_select %p740_p8, 1, 0 }
  0x12   : > { %s921_s22 = scalar_select %p744_p9, 1, 0 }
  0x13   : > { %s749_s23 = scalar_select %p40_p7, %s660_s11, %s42_s18  }
  0x14   : > { %p751_p11 = por %p113_p10, %p55_p3  ;;  %s758_s25 = sand.u32 1, %s660_s11  }
  0x15   : > { %s440_s26 = sshll.u32 %s758_s25, 3  ;;  %s452_s27 = sshll.u32 %s668_s13, 7 }
  0x16   : > { %s922_s24 = scalar_select %p751_p11, 1, 0 }
  0x17   : > { %s767_s30 = scalar_lea.hbm %s914_s0, %s452_s27  ;;  %s137_s3 = scalar_lea.vmem [#allocation5], %s440_s26 }
  0x18   : > { %s147_s4 = sshll.u32 %s137_s3, 4  ;;  %p775_p0 = pnand %p471_p13, %p734_p4  ;;  %s771_s4 = int_to_ptr.vmem [resolvable:$true] %s147_s4 }
  0x19   : > { %s134_s6 = scalar_lea.sflag [#allocation6], %s758_s25  ;;  %s526_s7 = scalar_lea.hbm %s767_s30, 128 }
  0x1a   : > { %p527_p3 = scmp.ne.s32.totalorder %s767_s30, %s526_s7  ;;  %p528_p5 = pneg %p775_p0 }
  0x1b   : > { %s531_s16 = scalar_lea.hbm %s914_s0, 256  ;;  %p532_p4 = scmp.lt.u32.totalorder %s767_s30, %s914_s0 }
  0x1c   : > { %p529_p6 = pnand %p528_p5, %p527_p3  ;;  %p533_p10 = scmp.lt.u32.totalorder %s531_s16, %s526_s7 }
  0x1d   : > { %p535_p12 = scmp.lt.u32.totalorder %s526_s7, %s767_s30 }
  0x1e   : > { %p530_p7 = pneg %p529_p6  ;;  %p534_p13 = por %p533_p10, %p532_p4 }
  0x20   : > { %p536_p1 = por %p535_p12, %p534_p13 }
  0x22   : > { %p537_p2 = pnand %p536_p1, %p530_p7 }
  0x24   : > { %540 = shalt.err (!%p537_p2)
}
  0x25   : > { %s541_s20 = scalar_lea.vmem %s771_s4, 128  ;;  %s674_s28 = smov [#allocation5]  }
  0x26   : > { %p542_p3 = scmp.ne.s32.totalorder %s771_s4, %s541_s20  ;;  %s546_s29 = sshll.u32 %s674_s28, 4  ;;  %s547_s29 = int_to_ptr.vmem [resolvable:$false] %s546_s29 }
  0x27   : > { %s548_s3 = scalar_lea.vmem %s547_s29, 256  ;;  %p549_p9 = scmp.lt.s32.totalorder %s771_s4, %s547_s29 }
  0x28   : > { %p544_p6 = pnand %p542_p3, %p528_p5  ;;  %p550_p4 = scmp.lt.s32.totalorder %s548_s3, %s541_s20 }
  0x2a   : > { %p545_p11 = pneg %p544_p6  ;;  %p551_p10 = por %p550_p4, %p549_p9 }
  0x2c   : > { %p552_p12 = pnand %p551_p10, %p545_p11 }
  0x2e   : > { %555 = shalt.err (!%p552_p12)
}
  0x2f   : > { %463 = dma.hbm_to_vmem [thread:$0]  (!%p775_p0), %s767_s30, 128, %s771_s4, %s134_s6  }
  0x30   : > { %p924_p1 = scmp.lt.s32.totalorder %s672_s14, 3  ;;  %p925_p2 = scmp.ge.s32.totalorder %s672_s14, 1 }
  0x31   : > { %s820_s16 = scalar_lea.hbm %s915_s1, %s452_s27  ;;  %s158_s18 = scalar_lea.vmem [#allocation8], %s440_s26 }
  0x32   : > { %p811_p7 = pnand %p925_p2, %p924_p1  ;;  %s168_s19 = sshll.u32 %s158_s18, 4  ;;  %s169_s19 = int_to_ptr.vmem [resolvable:$true] %s168_s19 }
  0x33   : > { %s155_s30 = scalar_lea.sflag [#allocation9], %s758_s25  ;;  %s556_s4 = scalar_lea.hbm %s820_s16, 128 }
  0x34   : > { %s926_s7 = scalar_select %p811_p7, 1, 0 }
  0x35   : > { %p557_p9 = scmp.ne.s32.totalorder %s820_s16, %s556_s4  ;;  %s561_s27 = scalar_lea.hbm %s915_s1, 256 }
  0x36   : > { %p562_p3 = scmp.lt.u32.totalorder %s820_s16, %s915_s1  ;;  %p563_p6 = scmp.lt.u32.totalorder %s561_s27, %s556_s4 }
  0x37   : > { %p559_p11 = pnand %p557_p9, %p528_p5  ;;  %p565_p10 = scmp.lt.u32.totalorder %s556_s4, %s820_s16 }
  0x38   : > { %p564_p4 = por %p563_p6, %p562_p3 }
  0x39   : > { %p560_p13 = pneg %p559_p11 }
  0x3a   : > { %p566_p12 = por %p565_p10, %p564_p4 }
  0x3c   : > { %p567_p1 = pnand %p566_p12, %p560_p13 }
  0x3e   : > { %570 = shalt.err (!%p567_p1)
}
  0x3f   : > { %s571_s25 = scalar_lea.vmem %s169_s19, 128  ;;  %s675_s26 = smov [#allocation8]  }
  0x40   : > { %p572_p2 = scmp.ne.s32.totalorder %s169_s19, %s571_s25  ;;  %s576_s3 = sshll.u32 %s675_s26, 4  ;;  %s577_s3 = int_to_ptr.vmem [resolvable:$false] %s576_s3 }
  0x41   : > { %s578_s8 = scalar_lea.vmem %s577_s3, 256  ;;  %p579_p8 = scmp.lt.s32.totalorder %s169_s19, %s577_s3 }
  0x42   : > { %p574_p9 = pnand %p572_p2, %p528_p5  ;;  %p580_p7 = scmp.lt.s32.totalorder %s578_s8, %s571_s25 }
  0x44   : > { %p575_p11 = pneg %p574_p9  ;;  %p581_p3 = por %p580_p7, %p579_p8 }
  0x46   : > { %p582_p6 = pnand %p581_p3, %p575_p11 }
  0x48   : > { %585 = shalt.err (!%p582_p6)
}
  0x49   : > { %466 = dma.hbm_to_vmem [thread:$0]  (!%p775_p0), %s820_s16, 128, %s169_s19, %s155_s30  }
  0x4a   : > { %p927_p13 = scmp.ne.s32.totalorder %s926_s7, 0 }
  0x4b   : > { %s847_s15 = sand.u32 (!%p927_p13), 1, %s656_s10   ;;  %p928_p5 = scmp.ne.s32.totalorder (!%p927_p13), %s920_s21, 0 }
  0x4c   : > { %177 = sbr.rel (%p927_p13) target bundleno = 300 (0x12c), region = 28  ;;  %s447_s18 = sshll.u32 (!%p927_p13), %s847_s15, 3 }
  0x4d   : > { %s180_s4 = scalar_lea.sflag (!%p927_p13), [#allocation6], %s847_s15  ;;  %s183_s6 = scalar_lea.vmem (!%p927_p13), [#allocation5], %s447_s18 }
  0x53   : > { %639 = dma.done.wait (%p928_p5), %s180_s4, 128  }
  0x54   : > { %641 = vsyncadd (%p928_p5), %s180_s4, 4294967168  ;;  %s189_s5 = scalar_lea.sflag [#allocation9], %s847_s15  ;;  %s192_s16 = scalar_lea.vmem [#allocation8], %s447_s18 }
  0x55   : > { %643 = dma.done.wait (%p928_p5), %s189_s5, 128  }
  0x56   : > { %645 = vsyncadd (%p928_p5), %s189_s5, 4294967168  ;;  %v676_v0 = vmov 0.0   ;;  %v226_v1 = vld [vmem:[%s183_s6] sm:$0xff]  ;;  %vm231_vm0 = vcmask 1043456   ;;  %v248_v2 = vld [vmem:[%s192_s16] sm:$0xff]  ;;  %vm294_vm1 = vcmask 1040384  }
  0x57   : > { %223 = vst [vmem:[#allocation2] sm:$0x1] %v676_v0  ;;  %224 = vst [vmem:[#allocation3] sm:$0x1] %v676_v0  ;;  %v227_v3 = vmul.f32 %v226_v1, %v226_v1  ;;  %v249_v4 = vmul.f32 %v248_v2, %v248_v2  ;;  %s449_s21 = sshll.u32 %s664_s12, 4  ;;  %s216_s7 = scalar_lea.vmem [#allocation10], %s847_s15 }
  0x58   : > { %225 = vst [vmem:[#allocation4] sm:$0x1] %v676_v0  ;;  %s333_s19 = sshll.u32 %s216_s7, 4  ;;  %s865_s27 = scalar_lea.hbm %s916_s2, %s449_s21  ;;  %s867_s19 = int_to_ptr.vmem [resolvable:$true] %s333_s19 }
  0x59   : > { %v229_v5 = vcombine.high %v227_v3, %v227_v3  ;;  %v232_v6 = vsel %vm231_vm0, %v227_v3, 0.0  ;;  %v251_v7 = vcombine.high %v249_v4, %v249_v4  ;;  %v253_v8 = vsel %vm231_vm0, %v249_v4, 0.0  ;;  %s321_s28 = scalar_lea.sflag [#allocation7], %s847_s15  ;;  %s586_s29 = scalar_lea.vmem %s867_s19, 16 }
  0x5a   : > { %v233_v9 = vrot.slane %v232_v6, 4  ;;  %v254_v10 = vrot.slane %v253_v8, 4  ;;  %p587_p8 = scmp.ne.s32.totalorder %s867_s19, %s586_s29  ;;  %p929_p0 = scmp.ne.s32.totalorder %s921_s22, 0 }
  0x5b   : > { %v239_v11 = vsel %vm231_vm0, %v229_v5, 0.0  ;;  %v260_v12 = vsel %vm231_vm0, %v251_v7, 0.0  ;;  %s677_s12 = smov [#allocation10]  }
  0x5c   : > { %v234_v13 = vadd.f32 %v233_v9, %v232_v6  ;;  %v240_v14 = vrot.slane %v239_v11, 4  ;;  %v255_v15 = vadd.f32 %v254_v10, %v253_v8  ;;  %v261_v16 = vrot.slane %v260_v12, 4  ;;  %p588_p7 = pnand %p587_p8, %p929_p0  ;;  %s590_s25 = sshll.u32 %s677_s12, 4  ;;  %s591_s25 = int_to_ptr.vmem [resolvable:$false] %s590_s25 }
  0x5d   : > { %s592_s26 = scalar_lea.vmem %s591_s25, 32  ;;  %p593_p10 = scmp.lt.s32.totalorder %s867_s19, %s591_s25 }
  0x5e   : > { %v235_v17 = vrot.slane %v234_v13, 2  ;;  %v241_v18 = vadd.f32 %v240_v14, %v239_v11  ;;  %v256_v19 = vrot.slane %v255_v15, 2  ;;  %v262_v20 = vadd.f32 %v261_v16, %v260_v12  ;;  %v281_v41 = vld [vmem:[#allocation2] sm:$0x1]  ;;  %v284_v42 = vld [vmem:[#allocation3] sm:$0x1]  ;;  %p589_p4 = pneg %p588_p7  ;;  %p594_p12 = scmp.lt.s32.totalorder %s592_s26, %s586_s29 }
  0x5f   : > { %v287_v43 = vld [vmem:[#allocation4] sm:$0x1] }
  0x60   : > { %v236_v21 = vadd.f32 %v235_v17, %v234_v13  ;;  %v242_v22 = vrot.slane %v241_v18, 2  ;;  %v257_v23 = vadd.f32 %v256_v19, %v255_v15  ;;  %v263_v24 = vrot.slane %v262_v20, 2  ;;  %p595_p1 = por %p594_p12, %p593_p10 }
  0x62   : > { %v237_v25 = vrot.slane %v236_v21, 1  ;;  %v243_v26 = vadd.f32 %v242_v22, %v241_v18  ;;  %v258_v27 = vrot.slane %v257_v23, 1  ;;  %v264_v28 = vadd.f32 %v263_v24, %v262_v20  ;;  %p596_p2 = pnand %p595_p1, %p589_p4 }
  0x64   : > { %v238_v29 = vadd.f32 %v237_v25, %v236_v21  ;;  %v244_v30 = vrot.slane %v243_v26, 1  ;;  %v259_v31 = vadd.f32 %v258_v27, %v257_v23  ;;  %v265_v32 = vrot.slane %v264_v28, 1 }
  0x66   : > { %v245_v33 = vadd.f32 %v244_v30, %v243_v26  ;;  %v269_v34 = vmul.f32 %v238_v29, %v238_v29  ;;  %v266_v35 = vadd.f32 %v265_v32, %v264_v28  ;;  %v271_v36 = vmul.f32 %v259_v31, %v259_v31 }
  0x67   : > { %v273_v37 = vmul.f32 %v259_v31, %v238_v29 }
  0x68   : > { %v275_v38 = vmul.f32 %v245_v33, %v245_v33  ;;  %v277_v39 = vmul.f32 %v266_v35, %v266_v35  ;;  %v279_v40 = vmul.f32 %v266_v35, %v245_v33 }
  0x6a   : > { %v276_v44 = vadd.f32 %v275_v38, %v269_v34  ;;  %v278_v45 = vadd.f32 %v277_v39, %v271_v36  ;;  %v280_v46 = vadd.f32 %v279_v40, %v273_v37 }
  0x6c   : > { %v282_v47 = vadd.f32 %v281_v41, %v276_v44  ;;  %v285_v48 = vadd.f32 %v284_v42, %v278_v45  ;;  %v288_v49 = vadd.f32 %v287_v43, %v280_v46 }
  0x6e   : > { %283 = vst [vmem:[#allocation2] sm:$0x1] %v282_v47  ;;  %286 = vst [vmem:[#allocation3] sm:$0x1] %v285_v48 }
  0x6f   : > { %289 = vst [vmem:[#allocation4] sm:$0x1] %v288_v49 }
  0x75   : > { %v293_v50 = vld [vmem:[#allocation2] sm:$0x1]  ;;  %v298_v51 = vld [vmem:[#allocation3] sm:$0x1] }
  0x76   : > { %v302_v52 = vld [vmem:[#allocation4] sm:$0x1]  ;;  %v295_v53 = vsel %vm294_vm1, %v293_v50, 0.0  ;;  %v299_v55 = vsel %vm294_vm1, %v298_v51, 0.0 }
  0x77   : > { %v303_v54 = vsel %vm294_vm1, %v302_v52, 0.0  ;;  %296 = vadd.xlane.f32.xlu0 %v295_v53 }
  0x78   : > { %304 = vadd.xlane.f32.xlu1 %v303_v54 }
  0x7b   : > { %300 = vadd.xlane.f32.xlu0 %v299_v55 }
 0x104   : > { %v297_v56 = vpop.xlane.xlu0 %296 }
 0x105   : > { %v306_v57 = vmax.f32 %v297_v56, 1.6e-23  ;;  %v305_v61 = vpop.xlane.xlu1 %304 }
 0x106   : > { %v315_v63 = vmul.f32 2.0, %v305_v61 }
 0x107   : > { %522 = vrsqrt.f32 %v306_v57 }
 0x108   : > { %v301_v58 = vpop.xlane.xlu0 %300 }
 0x109   : > { %v308_v59 = vmax.f32 %v301_v58, 1.6e-23 }
 0x10b   : > { %524 = vrsqrt.f32 %v308_v59 }
 0x111   : > { %v523_v60 = vpop.eup %522 }
 0x112   : > { %v310_v62 = vmul.f32 %v523_v60, %v297_v56  ;;  %v316_v4 = vmul.f32 %v523_v60, %v315_v63 }
 0x114   : > { %v311_v2 = vmul.f32 %v523_v60, %v310_v62 }
 0x115   : > { %v525_v0 = vpop.eup %524 }
 0x116   : > { %v312_v1 = vmul.f32 %v525_v0, %v301_v58  ;;  %v317_v6 = vmul.f32 %v525_v0, %v316_v4 }
 0x118   : > { %v313_v3 = vmul.f32 %v525_v0, %v312_v1 }
 0x11a   : > { %v314_v5 = vadd.f32 %v313_v3, %v311_v2 }
 0x11c   : > { %v318_v7 = vsub.f32 %v314_v5, %v317_v6 }
 0x11e   : > { %319 = vst [vmem:[%s216_s7] sm:$0x1] %v318_v7 }
 0x11f   : > { %599 = shalt.err (!%p596_p2)
}
 0x120   : > { %s600_s3 = scalar_lea.hbm %s865_s27, 16  ;;  %s604_s18 = scalar_lea.hbm %s916_s2, 32 }
 0x121   : > { %p601_p9 = scmp.ne.s32.totalorder %s865_s27, %s600_s3  ;;  %p605_p6 = scmp.lt.u32.totalorder %s865_s27, %s916_s2 }
 0x122   : > { %p606_p13 = scmp.lt.u32.totalorder %s604_s18, %s600_s3  ;;  %p608_p8 = scmp.lt.u32.totalorder %s600_s3, %s865_s27 }
 0x123   : > { %p602_p11 = pnand %p601_p9, %p929_p0 }
 0x124   : > { %p607_p5 = por %p606_p13, %p605_p6 }
 0x125   : > { %p603_p3 = pneg %p602_p11 }
 0x126   : > { %p609_p7 = por %p608_p8, %p607_p5 }
 0x128   : > { %p610_p4 = pnand %p609_p7, %p603_p3 }
 0x12a   : > { %613 = shalt.err (!%p610_p4)
}
 0x12b   : > { %458 = dma.vmem_to_hbm [thread:$0]  (%p929_p0), %s867_s19, 16, %s865_s27, %s321_s28  }
 0x12c PF: > { %s345_s5 = sand.u32 1, %s652_s9   ;;  %p930_p10 = scmp.ne.s32.totalorder %s922_s24, 0 }
 0x12d   : > { %p931_p12 = scmp.ge.s32.totalorder %s672_s14, 2  ;;  %s346_s16 = scalar_lea.sflag [#allocation7], %s345_s5 }
 0x12f   : > { %p468_p1 = pnand %p931_p12, %p930_p10 }
 0x131   : > { %647 = dma.done.wait (!%p468_p1), %s346_s16, 16  }
 0x132   : > { %649 = vsyncadd (!%p468_p1), %s346_s16, 4294967280  ;;  %s21_s14 = sadd.s32 1, %s672_s14   ;;  %s932_s9 = smov %s656_s10 }
 0x133   : > { %p18_p2 = scmp.ge.s32.totalorder %s21_s14, 4   ;;  %s933_s10 = smov %s660_s11 }
 0x134   : > { %s934_s11 = smov %s749_s23  ;;  %s935_s12 = smov %s668_s13 }
 0x135   : > { %s936_s13 = smov %s938_s17  ;;  %20 = sbr.rel (!%p18_p2) target bundleno = 8 (0x8), region = 94 }
 0x13c   :  { %350 = vsyncpa [#allocation6], 1 }
 0x13d   :  { %352 = vsyncpa [#allocation6 + $0x1], 1 }
 0x13e   :  { %353 = vsyncpa [#allocation9], 1 }
 0x13f   :  { %355 = vsyncpa [#allocation9 + $0x1], 1 }
 0x140   :  { %356 = vsyncpa [#allocation7], 1 }
 0x141   :  { %358 = vsyncpa [#allocation7 + $0x1], 1 }

</bundles_post_ra>
